<compile_context>
chip_gen: v5e
topology: v5e:2x2
jax: 0.10.0
libtpu: 0.0.40
codegen_flags: <defaults>
</compile_context>

<pallas_src>
import functools

import jax
import jax.numpy as jnp
from jax.experimental import pallas as pl
from jax.experimental.pallas import tpu as pltpu


def _round_up(x: int, m: int) -> int:
    return ((x + m - 1) // m) * m


def _mlp_body(x_ref, w1_ref, b1_ref, w2_ref, b2_ref, o_ref, drop_ref=None):
    # ---- fcl1: x @ W1 + b1 (bf16 operands, f32 accumulation on the MXU) ----
    h = jnp.dot(x_ref[...], w1_ref[...], preferred_element_type=jnp.float32)
    h = h + b1_ref[...]                       # b1 is (1, hidden) -> broadcasts over rows

    # ---- ReLU ----
    h = jnp.maximum(h, 0.0)

    # ---- Dropout: single fused multiply by precomputed {0, 1/(1-p)} scale ----
    if drop_ref is not None:
        h = h * drop_ref[...].astype(jnp.float32)

    # ---- fcl2: h @ W2 + b2 ----
    o = jnp.dot(h.astype(w2_ref.dtype), w2_ref[...],
                preferred_element_type=jnp.float32)
    o = o + b2_ref[...]
    o_ref[...] = o.astype(o_ref.dtype)


def _mlp_kernel_eval(x_ref, w1_ref, b1_ref, w2_ref, b2_ref, o_ref):
    _mlp_body(x_ref, w1_ref, b1_ref, w2_ref, b2_ref, o_ref)


def _mlp_kernel_train(x_ref, w1_ref, b1_ref, w2_ref, b2_ref, drop_ref, o_ref):
    _mlp_body(x_ref, w1_ref, b1_ref, w2_ref, b2_ref, o_ref, drop_ref)


def mlp_pallas(x, w1, b1, w2, b2, *, dropout_p=0.1, training=False, seed=0, tm=512):
    """x: [N, emb_dim]; w1: [emb_dim, hidden]; b1: [hidden];
    w2: [hidden, emb_dim]; b2: [emb_dim]. Returns [N, emb_dim] in x.dtype."""
    N, emb_dim = x.shape
    hidden = w1.shape[1]
    dropout_p = float(dropout_p)
    use_dropout = bool(training) and dropout_p > 0.0
    if use_dropout:
        assert 0.0 < dropout_p < 1.0, "dropout_p must be in [0, 1) when training"
    out_dtype = x.dtype

    # --- tile selection ------------------------------------------------------
    # Big row tiles amortize the ~0.35us/grid-step overhead and fill the MXU
    # rows; cap tm so there are >=2 grid steps when possible (v7x has 2 TCs and
    # shards the 'parallel' grid axis across them). Pad N instead of asserting
    # divisibility so tm is chosen for performance, not for whatever N is.
    tm_eff = max(8, min(int(tm), _round_up(pl.cdiv(N, 2), 8)))
    n_pad = _round_up(N, tm_eff)
    grid = (n_pad // tm_eff,)

    # --- operand prep ---------------------------------------------------------
    # bf16 MXU operands (native MXU path on v5e/v6e/v7x, halves activation HBM
    # traffic); biases / accumulation / dropout math stay f32.
    x_p = jnp.pad(x, ((0, n_pad - N), (0, 0))) if n_pad != N else x
    x_bf = x_p.astype(jnp.bfloat16)
    w1_bf = w1.astype(jnp.bfloat16)
    w2_bf = w2.astype(jnp.bfloat16)
    b1_2d = b1.reshape(1, hidden).astype(jnp.float32)
    b2_2d = b2.reshape(1, emb_dim).astype(jnp.float32)

    x_spec = pl.BlockSpec((tm_eff, emb_dim), lambda i: (i, 0))
    w1_spec = pl.BlockSpec((emb_dim, hidden), lambda i: (0, 0))   # resident
    b1_spec = pl.BlockSpec((1, hidden), lambda i: (0, 0))
    w2_spec = pl.BlockSpec((hidden, emb_dim), lambda i: (0, 0))   # resident
    b2_spec = pl.BlockSpec((1, emb_dim), lambda i: (0, 0))
    o_spec = pl.BlockSpec((tm_eff, emb_dim), lambda i: (i, 0))

    flops = 4 * n_pad * emb_dim * hidden                       # two matmuls
    bytes_accessed = (x_bf.size * 2 + n_pad * emb_dim * out_dtype.itemsize
                      + w1_bf.size * 2 + w2_bf.size * 2
                      + b1_2d.size * 4 + b2_2d.size * 4)

    if use_dropout:
        # TODO(synk): mask is generated host-side with jax.random (the on-chip
        # pltpu.prng_* path does not lower in interpret/CPU mode); same
        # Bernoulli(1-p) keep + 1/(1-p) scaling semantics as nn.Dropout, but a
        # different RNG stream than torch.
        keep = jax.random.bernoulli(jax.random.PRNGKey(int(seed)),
                                    1.0 - dropout_p, (n_pad, hidden))
        drop_scale = jnp.where(keep, 1.0 / (1.0 - dropout_p), 0.0
                               ).astype(jnp.bfloat16)
        bytes_accessed += drop_scale.size * 2
        kernel = _mlp_kernel_train
        in_specs = [x_spec, w1_spec, b1_spec, w2_spec, b2_spec,
                    pl.BlockSpec((tm_eff, hidden), lambda i: (i, 0))]
        args = (x_bf, w1_bf, b1_2d, w2_bf, b2_2d, drop_scale)
    else:
        kernel = _mlp_kernel_eval
        in_specs = [x_spec, w1_spec, b1_spec, w2_spec, b2_spec]
        args = (x_bf, w1_bf, b1_2d, w2_bf, b2_2d)

    out = pl.pallas_call(
        kernel,
        out_shape=jax.ShapeDtypeStruct((n_pad, emb_dim), out_dtype),
        grid=grid,
        in_specs=in_specs,
        out_specs=o_spec,
        compiler_params=pltpu.CompilerParams(
            dimension_semantics=("parallel",)),
        cost_estimate=pl.CostEstimate(flops=int(flops), transcendentals=0,
                                      bytes_accessed=int(bytes_accessed)),
    )(*args)

    return out[:N] if n_pad != N else out


def mlp_reference(x, w1, b1, w2, b2, drop_scale=None):
    """Pure-JAX reference with matching bf16 MXU operands / f32 accumulation."""
    h = jnp.dot(x.astype(jnp.bfloat16), w1.astype(jnp.bfloat16),
                preferred_element_type=jnp.float32) + b1
    h = jnp.maximum(h, 0.0)
    if drop_scale is not None:
        h = h * drop_scale.astype(jnp.float32)
    return jnp.dot(h.astype(jnp.bfloat16), w2.astype(jnp.bfloat16),
                   preferred_element_type=jnp.float32) + b2


if __name__ == "__main__":
    # Module config: emb_dim=32, ff_hidden_layer_scale=4 -> hidden=128, dropout=0.1
    emb_dim = 32
    scale = 4
    hidden = scale * emb_dim
    batch, seq = 2, 8
    N = batch * seq

    key = jax.random.PRNGKey(0)
    kx, k1, kb1, k2, kb2 = jax.random.split(key, 5)

    # Deterministic parameter init (mimics nn.Linear's U(-1/sqrt(fan_in), ...))
    lim1 = 1.0 / (emb_dim ** 0.5)
    lim2 = 1.0 / (hidden ** 0.5)
    w1 = jax.random.uniform(k1, (emb_dim, hidden), jnp.float32, -lim1, lim1)
    b1 = jax.random.uniform(kb1, (hidden,), jnp.float32, -lim1, lim1)
    w2 = jax.random.uniform(k2, (hidden, emb_dim), jnp.float32, -lim2, lim2)
    b2 = jax.random.uniform(kb2, (emb_dim,), jnp.float32, -lim2, lim2)

    # Input: [batch, seq, emb_dim] flattened to [N, emb_dim] token rows.
    x = jax.random.normal(kx, (batch, seq, emb_dim), jnp.float32)
    x2d = x.reshape(N, emb_dim)

    # ---- Eval mode (dropout identity) vs reference ----
    out = jax.block_until_ready(
        mlp_pallas(x2d, w1, b1, w2, b2, dropout_p=0.1, training=False))
    ref = mlp_reference(x2d, w1, b1, w2, b2)
    assert out.shape == (N, emb_dim)
    assert jnp.allclose(out, ref, atol=2e-3, rtol=2e-3), "eval-mode mismatch"

    # ---- Train mode: dropout via precomputed keep-scale ----
    seed = 123
    out_train = jax.block_until_ready(
        mlp_pallas(x2d, w1, b1, w2, b2, dropout_p=0.1, training=True, seed=seed))
    assert out_train.shape == (N, emb_dim)
    assert bool(jnp.all(jnp.isfinite(out_train)))
    # For this small test N is already tile-aligned, so the mask used inside the
    # wrapper is exactly reproducible here for a strict check.
    keep = jax.random.bernoulli(jax.random.PRNGKey(seed), 0.9, (N, hidden))
    drop_scale = jnp.where(keep, 1.0 / 0.9, 0.0).astype(jnp.bfloat16)
    ref_train = mlp_reference(x2d, w1, b1, w2, b2, drop_scale)
    assert jnp.allclose(out_train, ref_train, atol=2e-3, rtol=2e-3), "train-mode mismatch"

    print("KERNEL_OK")
</pallas_src>

<mosaic_0001>
module attributes {stable_mosaic.version = 11 : i64} {
  func.func @_mlp_kernel_eval(%arg0: i32, %arg1: memref<8x32xbf16, #tpu.memory_space<vmem>>, %arg2: memref<32x128xbf16, #tpu.memory_space<vmem>>, %arg3: memref<1x128xf32, #tpu.memory_space<vmem>>, %arg4: memref<128x32xbf16, #tpu.memory_space<vmem>>, %arg5: memref<1x32xf32, #tpu.memory_space<vmem>>, %arg6: memref<8x32xf32, #tpu.memory_space<vmem>>) attributes {dimension_semantics = [#tpu.dimension_semantics<parallel>], iteration_bounds = array<i64: 2>, scalar_prefetch = 0 : i64, scratch_operands = 0 : i64, tpu.core_type = #tpu.core_type<tc>, window_params = [{transform_indices = @transform_0, window_bounds = array<i64: 8, 32>}, {pipeline_mode = #tpu.pipeline_mode<synchronous>, transform_indices = @transform_1, window_bounds = array<i64: 32, 128>}, {pipeline_mode = #tpu.pipeline_mode<synchronous>, transform_indices = @transform_2, window_bounds = array<i64: 1, 128>}, {pipeline_mode = #tpu.pipeline_mode<synchronous>, transform_indices = @transform_3, window_bounds = array<i64: 128, 32>}, {pipeline_mode = #tpu.pipeline_mode<synchronous>, transform_indices = @transform_4, window_bounds = array<i64: 1, 32>}, {transform_indices = @transform_5, window_bounds = array<i64: 8, 32>}]} {
    %c0 = arith.constant 0 : index
    %c0_0 = arith.constant 0 : index
    %0 = vector.load %arg1[%c0, %c0_0] : memref<8x32xbf16, #tpu.memory_space<vmem>>, vector<8x32xbf16>
    %c0_1 = arith.constant 0 : index
    %c0_2 = arith.constant 0 : index
    %1 = vector.load %arg2[%c0_1, %c0_2] : memref<32x128xbf16, #tpu.memory_space<vmem>>, vector<32x128xbf16>
    %cst = arith.constant dense<0.000000e+00> : vector<8x128xf32>
    %2 = tpu.matmul %0, %1, %cst {dimension_numbers = #tpu.dot_dimension_numbers<[1], [0], [0], [1], [0, 0, 1, 1], [], []>} : vector<8x32xbf16>, vector<32x128xbf16>, vector<8x128xf32> -> vector<8x128xf32>
    %c0_3 = arith.constant 0 : index
    %c0_4 = arith.constant 0 : index
    %3 = vector.load %arg3[%c0_3, %c0_4] : memref<1x128xf32, #tpu.memory_space<vmem>>, vector<1x128xf32>
    %4 = vector.broadcast %3 : vector<1x128xf32> to vector<8x128xf32>
    %5 = arith.addf %2, %4 : vector<8x128xf32>
    %cst_5 = arith.constant 0.000000e+00 : f32
    %6 = vector.broadcast %cst_5 : f32 to vector<8x128xf32>
    %7 = arith.maximumf %5, %6 : vector<8x128xf32>
    %8 = arith.truncf %7 : vector<8x128xf32> to vector<8x128xbf16>
    %c0_6 = arith.constant 0 : index
    %c0_7 = arith.constant 0 : index
    %9 = vector.load %arg4[%c0_6, %c0_7] : memref<128x32xbf16, #tpu.memory_space<vmem>>, vector<128x32xbf16>
    %cst_8 = arith.constant dense<0.000000e+00> : vector<8x32xf32>
    %10 = tpu.matmul %8, %9, %cst_8 {dimension_numbers = #tpu.dot_dimension_numbers<[1], [0], [0], [1], [0, 0, 1, 1], [], []>} : vector<8x128xbf16>, vector<128x32xbf16>, vector<8x32xf32> -> vector<8x32xf32>
    %c0_9 = arith.constant 0 : index
    %c0_10 = arith.constant 0 : index
    %11 = vector.load %arg5[%c0_9, %c0_10] : memref<1x32xf32, #tpu.memory_space<vmem>>, vector<1x32xf32>
    %12 = vector.broadcast %11 : vector<1x32xf32> to vector<8x32xf32>
    %13 = arith.addf %10, %12 : vector<8x32xf32>
    %c0_11 = arith.constant 0 : index
    %c0_12 = arith.constant 0 : index
    %14 = vector.load %arg6[%c0_11, %c0_12] : memref<8x32xf32, #tpu.memory_space<vmem>>, vector<8x32xf32>
    tpu.vector_store %arg6[%c0_11, %c0_12], %13 {strides = array<i32>} : memref<8x32xf32, #tpu.memory_space<vmem>>, vector<8x32xf32>,
    return
  }
  func.func @transform_0(%arg0: i32) -> (i32, i32) {
    %c0_i32 = arith.constant 0 : i32
    %c0_i32_0 = arith.constant 0 : i32
    return %arg0, %c0_i32 : i32, i32
  }
  func.func @transform_1(%arg0: i32) -> (i32, i32) {
    %c0_i32 = arith.constant 0 : i32
    %c0_i32_0 = arith.constant 0 : i32
    %c0_i32_1 = arith.constant 0 : i32
    return %c0_i32, %c0_i32_0 : i32, i32
  }
  func.func @transform_2(%arg0: i32) -> (i32, i32) {
    %c0_i32 = arith.constant 0 : i32
    %c0_i32_0 = arith.constant 0 : i32
    %c0_i32_1 = arith.constant 0 : i32
    return %c0_i32, %c0_i32_0 : i32, i32
  }
  func.func @transform_3(%arg0: i32) -> (i32, i32) {
    %c0_i32 = arith.constant 0 : i32
    %c0_i32_0 = arith.constant 0 : i32
    %c0_i32_1 = arith.constant 0 : i32
    return %c0_i32, %c0_i32_0 : i32, i32
  }
  func.func @transform_4(%arg0: i32) -> (i32, i32) {
    %c0_i32 = arith.constant 0 : i32
    %c0_i32_0 = arith.constant 0 : i32
    %c0_i32_1 = arith.constant 0 : i32
    return %c0_i32, %c0_i32_0 : i32, i32
  }
  func.func @transform_5(%arg0: i32) -> (i32, i32) {
    %c0_i32 = arith.constant 0 : i32
    %c0_i32_0 = arith.constant 0 : i32
    return %arg0, %c0_i32 : i32, i32
  }
}

</mosaic_0001>

<bundles_post_ra>
// kernel: tpu_custom_call.1
= control target key start
LH: loop header
LB: loop body
LE: loop exit
PB: predicated region body
PF: predicated region fallthrough
CT: control target
= control target key end

     0   :  { %10 = vsyncpa [#allocation3], 0  ;;  %s737_s0 = inlined_call_operand.vmem [shape: bf16[16,32], index: 0, kind: input, shape index: {}]   ;;  %s738_s1 = inlined_call_operand.vmem [shape: bf16[32,128], index: 1, kind: input, shape index: {}]   ;;  %s739_s2 = inlined_call_operand.vmem [shape: f32[1,128], index: 2, kind: input, shape index: {}]   ;;  %s740_s3 = inlined_call_operand.vmem [shape: bf16[128,32], index: 3, kind: input, shape index: {}]   ;;  %s741_s4 = inlined_call_operand.vmem [shape: f32[1,32], index: 4, kind: input, shape index: {}]   ;;  %s742_s5 = inlined_call_operand.hbm [shape: f32[16,32], index: 5, kind: output, shape index: {}]  }
   0x1   :  { %12 = vsyncpa [#allocation3 + $0x1], 0  ;;  %s614_s18 = smov 0   ;;  %s616_s19 = smov 0  }
   0x2   :  { %s618_s20 = smov 0   ;;  %s620_s21 = smov 0  }
   0x3 LB: > { %s635_s22 = sadd.s32 4294967295, %s582_s21   ;;  %s418_s23 = sadd.s32 4294967294, %s582_s21   ;;  %s582_s21 = sphi %s620_s21, %s748_s21   ;;  %s578_s20 = sphi %s618_s20, %s747_s20   ;;  %s574_s19 = sphi %s616_s19, %s746_s19   ;;  %s570_s18 = sphi %s614_s18, %s745_s18  }
   0x4   : > { %s639_s24 = sadd.s32 1, %s582_s21   ;;  %s135_s25 = sadd.s32 1, %s578_s20 }
   0x5   : > { %s132_s26 = ssub.s32 %s582_s21, %s639_s24  ;;  %p145_p0 = scmp.ne.s32.totalorder %s578_s20, %s574_s19 }
   0x6   : > { %p133_p1 = scmp.eq.s32.totalorder %s132_s26, 0  ;;  %p146_p2 = scmp.eq.s32.totalorder %s635_s22, 1 }
   0x7   : > { %p151_p3 = scmp.ne.s32.totalorder %s574_s19, %s570_s18  ;;  %p152_p4 = scmp.eq.s32.totalorder %s418_s23, 1 }
   0x8   : > { %s650_s27 = scalar_select %p133_p1, %s578_s20, %s135_s25  }
   0x9   : > { %p652_p5 = por %p146_p2, %p145_p0  ;;  %p656_p6 = por %p152_p4, %p151_p3 }
   0xa   : > { %p421_p7 = scmp.ge.s32.totalorder %s582_s21, 1  ;;  %p189_p8 = scmp.lt.s32.totalorder %s582_s21, 3 }
   0xc   : > { %p190_p9 = pnand %p421_p7, %p189_p8 }
   0xd   : > { %p216_p10 = scmp.lt.s32.totalorder (!%p190_p9), %s635_s22, 1  ;;  %s213_s16 = sand.u32 (!%p190_p9), 1, %s574_s19  }
   0xe   : > { %193 = sbr.rel (%p190_p9) target bundleno = 293 (0x125), region = 40  ;;  %s422_s23 = sshll.u32 (!%p190_p9), %s213_s16, 3 }
   0xf   : > { %s215_s8 = scalar_lea.vmem (!%p190_p9), [#allocation2], %s422_s23  ;;  %s540_s15 = scalar_lea.hbm (!%p190_p9), %s742_s5, 16 }
  0x10   : > { %s356_s9 = sshll.u32 (!%p190_p9), %s215_s8, 4  ;;  %s357_s9 = int_to_ptr.vmem [resolvable:$true] %s356_s9 }
  0x13   : > { %v470_v0 = vld [vmem:[%s738_s1 + $0x8] sm:$0xff]  ;;  %v478_v1 = vld [vmem:[%s740_s3 + $0x38] sm:$0xff]  ;;  %v469_v2 = vld [vmem:[%s738_s1] sm:$0xff]  ;;  %s217_s11 = scalar_select %p216_p10, %s635_s22, 1  ;;  %vm242_vm0 = vcmask 261120  }
  0x14   : > { %252 = vmatpush.bf16.msra.mxu0 %v470_v0  ;;  %329 = vmatpush.bf16.msra.mxu1 %v478_v1  ;;  %v477_v3 = vld [vmem:[%s740_s3 + $0x30] sm:$0xff]  ;;  %v476_v5 = vld [vmem:[%s740_s3 + $0x28] sm:$0xff]  ;;  %v475_v6 = vld [vmem:[%s740_s3 + $0x20] sm:$0xff] }
  0x15   : > { %s423_s14 = sshll.u32 %s217_s11, 2  ;;  %v474_v7 = vld [vmem:[%s740_s3 + $0x18] sm:$0xff]  ;;  %v473_v8 = vld [vmem:[%s740_s3 + $0x10] sm:$0xff]  ;;  %v472_v9 = vld [vmem:[%s740_s3 + $0x8] sm:$0xff] }
  0x16   : > { %s219_s17 = scalar_lea.vmem %s737_s0, %s423_s14  ;;  %v471_v10 = vld [vmem:[%s740_s3] sm:$0xff] }
  0x17   : > { %v221_v4 = vld [vmem:[%s219_s17] sm:$0xf]  ;;  %s466_s17 = sshll.u32 %s635_s22, 3  ;;  %s344_s22 = scalar_lea.sflag [#allocation3], %s213_s16 }
  0x18   : > { %253 = vmatpush.bf16.msra.mxu0 %v469_v2  ;;  %330 = vmatpush.bf16.msra.mxu1 %v477_v3  ;;  %v518_v11 = vld [vmem:[%s739_s2] ss:$0 sm:$0xff]  ;;  %s354_s30 = scalar_lea.hbm %s742_s5, %s466_s17 }
  0x19   : > { %v519_v17 = vld [vmem:[%s741_s4] ss:$0 sm:$0xff]  ;;  %s358_s10 = sshll.u32 %s354_s30, 4  ;;  %s359_s10 = int_to_ptr.hbm [resolvable:$true] %s358_s10 }
  0x1a   : > { %s534_s11 = sshra.s32 %s359_s10, 4  ;;  %s535_s11 = int_to_ptr.hbm [resolvable:$true] %s534_s11 }
  0x1b   : > { %432 = vmatmul.msk.bf16.vlgmr.msra.gmra.mxu0 %vm242_vm0, %v221_v4  ;;  %s536_s12 = scalar_lea.hbm %s535_s11, 8  ;;  %p541_p0 = scmp.lt.s32.totalorder %s535_s11, %s742_s5 }
  0x1c   : > { %331 = vmatpush.bf16.msra.mxu1 %v476_v5  ;;  %p537_p11 = scmp.ne.s32.totalorder %s535_s11, %s536_s12  ;;  %p542_p1 = scmp.lt.s32.totalorder %s540_s15, %s536_s12 }
  0x1e   : > { %p538_p12 = pnand %p537_p11, %p652_p5  ;;  %p543_p2 = por %p542_p1, %p541_p0 }
  0x20   : > { %332 = vmatpush.bf16.msra.mxu1 %v475_v6  ;;  %p539_p13 = pneg %p538_p12 }
  0x22   : > { %p544_p3 = pnand %p543_p2, %p539_p13 }
  0x24   : > { %333 = vmatpush.bf16.msra.mxu1 %v474_v7 }
  0x28   : > { %334 = vmatpush.bf16.msra.mxu1 %v473_v8 }
  0x2c   : > { %335 = vmatpush.bf16.msra.mxu1 %v472_v9 }
  0x30   : > { %336 = vmatpush.bf16.msra.mxu1 %v471_v10 }
  0x98   : > { %v255_v12 = vpop.f32.mrf.mxu0 }
  0x99   : > { %v256_v13 = vadd.f32 %v518_v11, %v255_v12 }
  0x9b   : > { %v259_v14 = vmax.f32 %v256_v13, 0.0 }
  0x9d   : > { %v260_v15 = vpack.c.bf16 %v259_v14, %v259_v14 }
  0x9f   : > { %337 = vmatmul.bf16.vlgmr.msra.gmra.mxu1 %v260_v15 }
  0xa0   : > { %v257_v16 = vpop.f32.mrf.mxu0 }
 0x11c   : > { %v338_v18 = vpop.f32.mrf.mxu1 }
 0x11d   : > { %v339_v19 = vadd.f32 %v519_v17, %v338_v18 }
 0x11f   : > { %342 = vst.msk [vmem:[%s215_s8] sm:$0xff] %vm242_vm0, %v339_v19 }
 0x120   : > { %547 = shalt.err (!%p544_p3)
}
 0x121   : > { %479 = dma.vmem_to_hbm [thread:$0]  (%p652_p5), %s357_s9, 128, %s359_s10, %s344_s22  }
 0x124   : > { %v340_v20 = vpop.f32.mrf.mxu1 }
 0x125 PF: > { %p485_p4 = scmp.ge.s32.totalorder %s582_s21, 2  ;;  %s370_s16 = sand.u32 1, %s570_s18  }
 0x126   : > { %s371_s25 = scalar_lea.sflag [#allocation3], %s370_s16 }
 0x127   : > { %p482_p7 = pnand %p485_p4, %p656_p6 }
 0x129   : > { %p483_p8 = pneg %p482_p7 }
 0x12b   : > { %565 = dma.done.wait (%p483_p8), %s371_s25, 128  }
 0x12c   : > { %567 = vsyncadd (%p483_p8), %s371_s25, 4294967168  ;;  %p15_p9 = scmp.ge.s32.totalorder %s639_s24, 4   ;;  %s745_s18 = smov %s574_s19 }
 0x12d   : > { %s746_s19 = smov %s578_s20  ;;  %s747_s20 = smov %s650_s27 }
 0x12e   : > { %s748_s21 = smov %s639_s24  ;;  %17 = sbr.rel (!%p15_p9) target bundleno = 3 (0x3), region = 75 }
 0x133   :  { %377 = vsyncpa [#allocation3], 1 }
 0x134   :  { %379 = vsyncpa [#allocation3 + $0x1], 1 }

</bundles_post_ra>
